<compile_context>
chip_gen: v7x
topology: tpu7x:2x2x1
jax: 0.10.0
libtpu: 0.0.40
codegen_flags: <defaults>
</compile_context>

<pallas_src>
import functools

import jax
import jax.numpy as jnp
from jax.experimental import pallas as pl
from jax.experimental.pallas import tpu as pltpu

_LANE = 128
_SUBLANE = 8
# ~4 MiB per f32 block; with double-buffered input + output that is ~16 MiB of VMEM.
_TARGET_TILE_ELEMS = 1 << 20
_VMEM_LIMIT = 32 * 1024 * 1024


# ---------------------------------------------------------------------------
# Tiling helpers
# ---------------------------------------------------------------------------
def _row_tile(rows, cap=256):
    """Largest multiple of 8 dividing `rows` (<= cap); full extent if rows % 8 != 0."""
    if rows % _SUBLANE != 0:
        return rows  # block dim equal to the full array dim is always allowed
    best, t = _SUBLANE, _SUBLANE
    while t <= min(rows, cap):
        if rows % t == 0:
            best = t
        t += _SUBLANE
    return best


def _lane_tile(m_pad, tr):
    """Largest multiple of 128 dividing m_pad with tr * tile under the VMEM budget."""
    cap = max(_LANE, _TARGET_TILE_ELEMS // max(tr, 1))
    best, t = _LANE, _LANE
    while t <= min(m_pad, cap):
        if m_pad % t == 0:
            best = t
        t += _LANE
    return best


def _pad_lanes(x2):
    """Zero-pad the last axis up to a multiple of 128 (no-op when already aligned)."""
    m = x2.shape[1]
    m_pad = ((m + _LANE - 1) // _LANE) * _LANE
    if m_pad != m:
        x2 = jnp.pad(x2, ((0, 0), (0, m_pad - m)))
    return x2


# ---------------------------------------------------------------------------
# Kernels
# ---------------------------------------------------------------------------
def _affine_kernel(x_ref, loc_ref, scale_ref, o_ref):
    # h = scale * (x + loc), with (rows, 1) loc/scale broadcast along lanes.
    x = x_ref[...].astype(jnp.float32)
    o_ref[...] = (scale_ref[...] * (x + loc_ref[...])).astype(o_ref.dtype)


def _row_sum_kernel(x_ref, sum_ref):
    # Per-row sum, accumulated across the trailing (reduction) grid axis.
    @pl.when(pl.program_id(1) == 0)
    def _():
        sum_ref[...] = jnp.zeros_like(sum_ref)

    sum_ref[...] += jnp.sum(x_ref[...].astype(jnp.float32), axis=1, keepdims=True)


def _row_css_kernel(x_ref, mean_ref, css_ref, *, tm, m_real):
    # Per-row centered sum of squares; padded lanes (col >= m_real) are masked out.
    j = pl.program_id(1)

    @pl.when(j == 0)
    def _():
        css_ref[...] = jnp.zeros_like(css_ref)

    col = j * tm + jax.lax.broadcasted_iota(jnp.int32, x_ref.shape, 1)
    d = x_ref[...].astype(jnp.float32) - mean_ref[...]
    d = jnp.where(col < m_real, d, 0.0)
    css_ref[...] += jnp.sum(d * d, axis=1, keepdims=True)


# ---------------------------------------------------------------------------
# pallas_call wrappers
# ---------------------------------------------------------------------------
def _affine_call(x2, loc_rows, scale_rows):
    rows, m_pad = x2.shape
    tr = _row_tile(rows)
    tm = _lane_tile(m_pad, tr)
    grid = (rows // tr, m_pad // tm)
    return pl.pallas_call(
        _affine_kernel,
        out_shape=jax.ShapeDtypeStruct((rows, m_pad), x2.dtype),
        grid_spec=pltpu.PrefetchScalarGridSpec(
            num_scalar_prefetch=0,
            grid=grid,
            in_specs=[pl.BlockSpec((tr, tm), lambda i, j: (i, j)),
                      pl.BlockSpec((tr, 1), lambda i, j: (i, 0)),
                      pl.BlockSpec((tr, 1), lambda i, j: (i, 0))],
            out_specs=pl.BlockSpec((tr, tm), lambda i, j: (i, j))),
        compiler_params=pltpu.CompilerParams(
            dimension_semantics=("parallel", "parallel"),
            vmem_limit_bytes=_VMEM_LIMIT),
    )(x2, loc_rows, scale_rows)


def _row_sum_call(x2):
    rows, m_pad = x2.shape
    tr = _row_tile(rows)
    tm = _lane_tile(m_pad, tr)
    grid = (rows // tr, m_pad // tm)
    return pl.pallas_call(
        _row_sum_kernel,
        out_shape=jax.ShapeDtypeStruct((rows, 1), jnp.float32),
        grid_spec=pltpu.PrefetchScalarGridSpec(
            num_scalar_prefetch=0,
            grid=grid,
            in_specs=[pl.BlockSpec((tr, tm), lambda i, j: (i, j))],
            out_specs=pl.BlockSpec((tr, 1), lambda i, j: (i, 0))),
        compiler_params=pltpu.CompilerParams(
            dimension_semantics=("parallel", "arbitrary"),
            vmem_limit_bytes=_VMEM_LIMIT),
    )(x2)


def _row_css_call(x2, mean_rows, m_real):
    rows, m_pad = x2.shape
    tr = _row_tile(rows)
    tm = _lane_tile(m_pad, tr)
    grid = (rows // tr, m_pad // tm)
    kernel = functools.partial(_row_css_kernel, tm=tm, m_real=m_real)
    return pl.pallas_call(
        kernel,
        out_shape=jax.ShapeDtypeStruct((rows, 1), jnp.float32),
        grid_spec=pltpu.PrefetchScalarGridSpec(
            num_scalar_prefetch=0,
            grid=grid,
            in_specs=[pl.BlockSpec((tr, tm), lambda i, j: (i, j)),
                      pl.BlockSpec((tr, 1), lambda i, j: (i, 0))],
            out_specs=pl.BlockSpec((tr, 1), lambda i, j: (i, 0))),
        compiler_params=pltpu.CompilerParams(
            dimension_semantics=("parallel", "arbitrary"),
            vmem_limit_bytes=_VMEM_LIMIT),
    )(x2, mean_rows)


# ---------------------------------------------------------------------------
# Functional ActNorm pieces
# ---------------------------------------------------------------------------
def actnorm_stats(x4):
    """Per-channel loc = -mean, scale = 1/(std + 1e-6) (unbiased std), as in PyTorch."""
    n, c, h, w = x4.shape
    m = h * w
    x2 = _pad_lanes(x4.reshape(n * c, m))       # free reshape; pad only if unaligned
    count = float(n * m)

    # pass 1: per-(n,c) row sums -> per-channel mean (tiny O(N*C) combine in JAX)
    row_sum = _row_sum_call(x2)                                   # (N*C, 1)
    mean_c = row_sum.reshape(n, c).sum(axis=0) / count            # (C,)

    # pass 2: centered sum of squares (avoids E[x^2]-E[x]^2 cancellation)
    mean_rows = jnp.broadcast_to(mean_c[None, :], (n, c)).reshape(n * c, 1)
    row_css = _row_css_call(x2, mean_rows, m)                     # (N*C, 1)
    css_c = row_css.reshape(n, c).sum(axis=0)                     # (C,)

    denom = max(count - 1.0, 1.0)
    std_c = jnp.sqrt(css_c / denom)
    return -mean_c, 1.0 / (std_c + 1e-6)


def actnorm_affine(x4, a_c, b_c):
    """Channel-broadcast affine  a_c * (x + b_c)  on an NCHW tensor, via Pallas."""
    n, c, h, w = x4.shape
    m = h * w
    x2 = _pad_lanes(x4.reshape(n * c, m))
    a_rows = jnp.broadcast_to(a_c.astype(jnp.float32)[None, :], (n, c)).reshape(n * c, 1)
    b_rows = jnp.broadcast_to(b_c.astype(jnp.float32)[None, :], (n, c)).reshape(n * c, 1)
    h2 = _affine_call(x2, b_rows, a_rows)
    if h2.shape[1] != m:
        h2 = h2[:, :m]
    return h2.reshape(n, c, h, w)


# ---------------------------------------------------------------------------
# Module
# ---------------------------------------------------------------------------
class ActNorm:
    """JAX/Pallas port of the PyTorch ActNorm module (forward + reverse)."""

    def __init__(self, num_features, logdet=False, affine=True):
        assert affine
        self.num_features = num_features
        self.logdet = logdet
        self.loc = jnp.zeros((1, num_features, 1, 1), jnp.float32)
        self.scale = jnp.ones((1, num_features, 1, 1), jnp.float32)
        # TODO(synk): Python-side init flag; under jax.jit the data-dependent init is
        # baked in at trace time (unlike the PyTorch uint8 buffer semantics).
        self.initialized = False

    def initialize(self, x4):
        loc_c, scale_c = actnorm_stats(x4)
        self.loc = loc_c.reshape(1, self.num_features, 1, 1)
        self.scale = scale_c.reshape(1, self.num_features, 1, 1)

    def __call__(self, x, reverse=False):
        if reverse:
            return self.reverse(x)
        squeeze = (x.ndim == 2)
        x4 = x[:, :, None, None] if squeeze else x
        _, C, H, W = x4.shape

        if not self.initialized:
            self.initialize(x4)
            self.initialized = True

        scale_c = self.scale.reshape(C)
        loc_c = self.loc.reshape(C)
        h = actnorm_affine(x4, scale_c, loc_c)        # scale * (x + loc)
        if squeeze:
            h = h[:, :, 0, 0]

        if self.logdet:
            # tiny parameter-only (O(C)) reduction; kept as plain-JAX glue
            log_abs = jnp.log(jnp.abs(self.scale))
            logdet = H * W * jnp.sum(log_abs)
            logdet = logdet * jnp.ones((x4.shape[0],), dtype=x.dtype)
            return h, logdet
        return h

    def reverse(self, output):
        squeeze = (output.ndim == 2)
        x4 = output[:, :, None, None] if squeeze else output
        _, C, _, _ = x4.shape
        scale_c = self.scale.reshape(C)
        loc_c = self.loc.reshape(C)
        # x/scale - loc  ==  (1/scale) * (x + (-loc*scale))  -> reuse the affine kernel
        h = actnorm_affine(x4, 1.0 / scale_c, -loc_c * scale_c)
        if squeeze:
            h = h[:, :, 0, 0]
        return h


if __name__ == "__main__":
    key = jax.random.PRNGKey(0)
    N, C, H, W = 2, 4, 16, 16
    x = jax.random.normal(key, (N, C, H, W), dtype=jnp.float32) * 2.0 + 0.5

    model = ActNorm(num_features=C, logdet=True)
    h, logdet = model(x)            # first call triggers data-dependent init
    h = jax.block_until_ready(h)
    logdet = jax.block_until_ready(logdet)

    # pure-JAX reference mirroring the PyTorch semantics (unbiased std)
    flat = jnp.transpose(x, (1, 0, 2, 3)).reshape(C, -1)
    mean = flat.mean(axis=1)
    std = flat.std(axis=1, ddof=1)
    loc_ref = -mean.reshape(1, C, 1, 1)
    scale_ref = (1.0 / (std + 1e-6)).reshape(1, C, 1, 1)
    h_ref = scale_ref * (x + loc_ref)
    logdet_ref = H * W * jnp.sum(jnp.log(jnp.abs(scale_ref))) * jnp.ones((N,), jnp.float32)

    assert jnp.allclose(h, h_ref, atol=1e-4, rtol=1e-4)
    assert jnp.allclose(logdet, logdet_ref, atol=1e-3, rtol=1e-4)

    # reverse path (round-trip)
    x_back = jax.block_until_ready(model(h, reverse=True))
    assert jnp.allclose(x_back, x, atol=1e-3, rtol=1e-4)

    # 2-D input path (N, C), exercises the lane-padding branch (H*W = 1 -> pad to 128)
    x2d = jax.random.normal(jax.random.PRNGKey(1), (4, C), dtype=jnp.float32)
    m2 = ActNorm(num_features=C, logdet=False)
    h2d = jax.block_until_ready(m2(x2d))
    mean2 = x2d.mean(axis=0)
    std2 = x2d.std(axis=0, ddof=1)
    h2d_ref = (1.0 / (std2 + 1e-6)) * (x2d - mean2)
    assert jnp.allclose(h2d, h2d_ref, atol=1e-4, rtol=1e-4)

    print("KERNEL_OK")
</pallas_src>

<mosaic_0001>
module attributes {stable_mosaic.version = 11 : i64} {
  func.func @_row_sum_kernel(%arg0: i32, %arg1: i32, %arg2: memref<8x256xf32, #tpu.memory_space<vmem>>, %arg3: memref<8x1xf32, #tpu.memory_space<vmem>>) attributes {dimension_semantics = [#tpu.dimension_semantics<parallel>, #tpu.dimension_semantics<arbitrary>], iteration_bounds = array<i64: 1, 1>, scalar_prefetch = 0 : i64, scratch_operands = 0 : i64, tpu.core_type = #tpu.core_type<tc>, window_params = [{transform_indices = @transform_0, window_bounds = array<i64: 8, 256>}, {transform_indices = @transform_1, window_bounds = array<i64: 8, 1>}]} {
    %c0_i32 = arith.constant 0 : i32
    %0 = arith.cmpi eq, %arg1, %c0_i32 : i32
    %1 = arith.extui %0 : i1 to i32
    %c0_i32_0 = arith.constant 0 : i32
    %2 = arith.cmpi ne, %1, %c0_i32_0 : i32
    scf.if %2 {
      %cst_6 = arith.constant 0.000000e+00 : f32
      %9 = vector.broadcast %cst_6 : f32 to vector<8x1xf32>
      %c0_7 = arith.constant 0 : index
      %c0_8 = arith.constant 0 : index
      %10 = vector.load %arg3[%c0_7, %c0_8] : memref<8x1xf32, #tpu.memory_space<vmem>>, vector<8x1xf32>
      tpu.vector_store %arg3[%c0_7, %c0_8], %9 {strides = array<i32>} : memref<8x1xf32, #tpu.memory_space<vmem>>, vector<8x1xf32>,
    } else {
    }
    %c0 = arith.constant 0 : index
    %c0_1 = arith.constant 0 : index
    %3 = vector.load %arg3[%c0, %c0_1] : memref<8x1xf32, #tpu.memory_space<vmem>>, vector<8x1xf32>
    %c0_2 = arith.constant 0 : index
    %c0_3 = arith.constant 0 : index
    %4 = vector.load %arg2[%c0_2, %c0_3] : memref<8x256xf32, #tpu.memory_space<vmem>>, vector<8x256xf32>
    %cst = arith.constant dense<0.000000e+00> : vector<8xf32>
    %5 = vector.multi_reduction <add>, %4, %cst [1] : vector<8x256xf32> to vector<8xf32>
    %6 = vector.shape_cast %5 : vector<8xf32> to vector<8x1xf32>
    %7 = arith.addf %3, %6 : vector<8x1xf32>
    %c0_4 = arith.constant 0 : index
    %c0_5 = arith.constant 0 : index
    %8 = vector.load %arg3[%c0_4, %c0_5] : memref<8x1xf32, #tpu.memory_space<vmem>>, vector<8x1xf32>
    tpu.vector_store %arg3[%c0_4, %c0_5], %7 {strides = array<i32>} : memref<8x1xf32, #tpu.memory_space<vmem>>, vector<8x1xf32>,
    return
  }
  func.func @transform_0(%arg0: i32, %arg1: i32) -> (i32, i32) {
    %c0_i32 = arith.constant 0 : i32
    return %arg0, %arg1 : i32, i32
  }
  func.func @transform_1(%arg0: i32, %arg1: i32) -> (i32, i32) {
    %c0_i32 = arith.constant 0 : i32
    %c0_i32_0 = arith.constant 0 : i32
    return %arg0, %c0_i32 : i32, i32
  }
}

</mosaic_0001>

<bundles_post_ra>
// kernel: tpu_custom_call.1
= control target key start
LH: loop header
LB: loop body
LE: loop exit
PB: predicated region body
PF: predicated region fallthrough
CT: control target
= control target key end

     0   :  { %6 = vsyncpa [#allocation3], 0  ;;  %s66_s6 = smov [#allocation2]   ;;  %s99_s0 = inlined_call_operand.hbm [shape: f32[8,256], index: 0, kind: input, shape index: {}]   ;;  %s100_s1 = inlined_call_operand.vmem [shape: f32[8,1], index: 1, kind: output, shape index: {}]  }
   0x1   :  { %s13_s7 = sshll.u32 %s66_s6, 4  ;;  %s42_s10 = scalar_lea.hbm %s99_s0, 256  ;;  %s14_s7 = int_to_ptr.vmem [resolvable:$true] %s13_s7 }
   0x2   :  { %p43_p0 = scmp.ne.s32.totalorder %s99_s0, %s42_s10  ;;  %p46_p1 = scmp.lt.u32.totalorder %s42_s10, %s99_s0 }
   0x4   :  { %p48_p2 = pnand %p46_p1, %p43_p0 }
   0x6   :  { %51 = shalt.err (!%p48_p2)
}
   0x7   :  { %s52_s15 = scalar_lea.vmem %s14_s7, 256  ;;  %p57_p4 = scmp.lt.s32.totalorder %s14_s7, %s14_s7 }
   0x8   :  { %p53_p3 = scmp.ne.s32.totalorder %s14_s7, %s52_s15  ;;  %p58_p5 = scmp.lt.s32.totalorder %s52_s15, %s52_s15 }
   0xa   :  { %p59_p6 = por %p58_p5, %p57_p4 }
   0xc   :  { %p60_p7 = pnand %p59_p6, %p53_p3 }
   0xe   :  { %63 = shalt.err (!%p60_p7)
}
   0xf   :  { %16 = dma.hbm_to_vmem [thread:$0]  %s99_s0, 256, %s14_s7, [#allocation3]  }
  0x10   :  { %64 = dma.done.wait [#allocation3], 256  }
  0x11   :  { %65 = vsyncadd [#allocation3], 4294967040  ;;  %vm24_vm0 = vcmask 7168   ;;  %v67_v0 = vmov 0.0   ;;  %v27_v1 = vld [vmem:[#allocation2] sm:$0xff]  ;;  %v28_v2 = vld [vmem:[#allocation2 + $0x8] sm:$0xff] }
  0x12   :  { %25 = vst.msk [vmem:[%s100_s1] sm:$0xff] %vm24_vm0, %v67_v0  ;;  %v29_v3 = vadd.f32 %v28_v2, %v27_v1 }
  0x14   :  { %30 = vadd.xlane.f32.xlu0 %v29_v3 }
  0x19   :  { %v26_v4 = vld [vmem:[%s100_s1] sm:$0xff] }
  0xa1   :  { %v31_v5 = vpop.xlane.xlu0 %30 }
  0xa2   :  { %v32_v6 = vadd.f32 %v31_v5, %v26_v4 }
  0xa4   :  { %34 = vst.msk [vmem:[%s100_s1] sm:$0xff] %vm24_vm0, %v32_v6 }
  0xa5   :  { %39 = vsyncpa [#allocation3], 1 }

</bundles_post_ra>
